<compile_context>
chip_gen: v7x
topology: tpu7x:2x2x1
jax: 0.10.0
libtpu: 0.0.40
codegen_flags: <defaults>
</compile_context>

<pallas_src>
import jax
import jax.numpy as jnp
from jax.experimental import pallas as pl
from jax.experimental.pallas import tpu as pltpu


def _round_up(a, b):
    return (a + b - 1) // b * b


def _embedder_kernel(pos_ref, x_ref, ind_ref, wpos_ref, wproj_ref, wbias_ref,
                     out_ref):
    # Three MXU dots per token tile, accumulated in f32 vregs:
    #   fmask tokens   : pos_g @ Wpos                        (bf16 by default)
    #   dmask tokens   : x_g   @ Wproj                       (bf16 by default)
    #   indicator cols : [fmask, dmask, cls one-hot] @
    #                    [bpos+mask_token ; bproj ; cls_pos_emb]   (f32, exact)
    acc = jnp.dot(pos_ref[...], wpos_ref[...],
                  preferred_element_type=jnp.float32)
    acc = acc + jnp.dot(x_ref[...], wproj_ref[...],
                        preferred_element_type=jnp.float32)
    acc = acc + jnp.dot(ind_ref[...], wbias_ref[...],
                        preferred_element_type=jnp.float32)
    out_ref[...] = acc.astype(out_ref.dtype)


def dpx_mae_decoder_embed(x, pos, amask, dmask, params, *, num_cls_tokens=1,
                          tile_tokens=1024, compute_dtype=jnp.bfloat16,
                          out_dtype=jnp.float32):
    wpos, bpos, wproj, bproj, mask_token, cls_pos_emb = params
    B, M = amask.shape
    P2, D = wpos.shape
    E = wproj.shape[0]
    C = num_cls_tokens
    KB = 2 + C                                   # indicator / bias columns
    T = B * M

    # ---------------- glue (plain JAX): masks, gather, operands --------------
    amask = amask.at[:, 0].set(False)
    fmask = amask & ~dmask                       # (B, M) bool, returned
    fm = fmask.reshape(-1)
    dm = dmask.reshape(-1)

    pos_rows = pos if pos.shape[0] > 0 else jnp.zeros((1, P2), jnp.float32)
    x_rows = x if x.shape[0] > 0 else jnp.zeros((1, E), jnp.float32)
    # Ragged boolean scatter -> dense per-token gather (raster order of True
    # positions matches PyTorch boolean-mask assignment).
    fidx = jnp.clip(jnp.cumsum(fm.astype(jnp.int32)) - 1, 0,
                    pos_rows.shape[0] - 1)
    didx = jnp.clip(jnp.cumsum(dm.astype(jnp.int32)) - 1, 0,
                    x_rows.shape[0] - 1)
    # Pre-zero unselected rows so masked-out tokens contribute exact zeros
    # (no 0*NaN / 0*Inf hazards, no mask streams into the kernel).
    pos_g = jnp.where(fm[:, None], pos_rows[fidx], 0.0).astype(compute_dtype)
    x_g = jnp.where(dm[:, None], x_rows[didx], 0.0).astype(compute_dtype)

    m_ids = jnp.arange(T, dtype=jnp.int32) % M
    ind = jnp.concatenate(
        [fm.astype(jnp.float32)[:, None],
         dm.astype(jnp.float32)[:, None],
         (m_ids[:, None] == jnp.arange(C, dtype=jnp.int32)[None, :]
          ).astype(jnp.float32)], axis=1)                     # (T, 2+C) f32

    w_pos = wpos.astype(compute_dtype)                         # (P2, D)
    w_proj = wproj.astype(compute_dtype)                       # (E, D)
    w_bias = jnp.concatenate(
        [(bpos + mask_token.reshape(-1)).reshape(1, D),
         bproj.reshape(1, D),
         cls_pos_emb.reshape(C, D)], axis=0).astype(jnp.float32)  # (2+C, D)

    # ---------------- tile the token axis -------------------------------------
    tile = min(int(tile_tokens), _round_up(T, 16))
    if T > 16:   # >=2 grid steps so "parallel" shards across both v7x TCs
        tile = min(tile, _round_up(-(-T // 2), 16))
    tile = _round_up(max(tile, 16), 16)          # sublane-aligned (f32 & bf16)
    Tp = _round_up(T, tile)
    if Tp != T:                                  # zero rows -> zero outputs
        pad = ((0, Tp - T), (0, 0))
        pos_g = jnp.pad(pos_g, pad)
        x_g = jnp.pad(x_g, pad)
        ind = jnp.pad(ind, pad)

    cbytes = jnp.dtype(compute_dtype).itemsize
    obytes = jnp.dtype(out_dtype).itemsize
    flops = 2 * Tp * (P2 + E + KB) * D
    bytes_accessed = (Tp * (P2 + E) * cbytes + Tp * KB * 4
                      + (P2 + E) * D * cbytes + KB * D * 4
                      + Tp * D * obytes)
    vmem_needed = (2 * tile * (P2 + E) * cbytes          # token streams (x2)
                   + 2 * tile * KB * 4                   # indicator block (x2)
                   + (P2 + E) * D * cbytes + KB * D * 4  # weights (single buf)
                   + 2 * tile * D * obytes)              # output (x2)
    vmem_limit = int(min(max(2 * vmem_needed, 32 * 1024 * 1024),
                         64 * 1024 * 1024))

    def run(single_buffer_weights):
        wkw = ({"pipeline_mode": pl.Buffered(1)}
               if single_buffer_weights else {})
        grid_spec = pltpu.PrefetchScalarGridSpec(
            num_scalar_prefetch=0,
            grid=(Tp // tile,),
            in_specs=[
                pl.BlockSpec((tile, P2), lambda i: (i, 0)),    # pos_g tile
                pl.BlockSpec((tile, E), lambda i: (i, 0)),     # x_g tile
                pl.BlockSpec((tile, KB), lambda i: (i, 0)),    # indicators
                pl.BlockSpec((P2, D), lambda i: (0, 0), **wkw),   # Wpos
                pl.BlockSpec((E, D), lambda i: (0, 0), **wkw),    # Wproj
                pl.BlockSpec((KB, D), lambda i: (0, 0), **wkw),   # biases
            ],
            out_specs=pl.BlockSpec((tile, D), lambda i: (i, 0)),
        )
        return pl.pallas_call(
            _embedder_kernel,
            out_shape=jax.ShapeDtypeStruct((Tp, D), out_dtype),
            grid_spec=grid_spec,
            compiler_params=pltpu.CompilerParams(
                dimension_semantics=("parallel",),
                vmem_limit_bytes=vmem_limit),
            cost_estimate=pl.CostEstimate(
                flops=flops, transcendentals=0,
                bytes_accessed=bytes_accessed),
        )(pos_g, x_g, ind, w_pos, w_proj, w_bias)

    try:
        out = run(True)
    except Exception:
        # Fallback if this JAX version rejects Buffered(1); the constant
        # index_map still skips re-DMA, it just costs one extra weight copy
        # of VMEM.
        out = run(False)

    embed = out[:T].reshape(B, M, D)
    return embed, fmask


def _reference(x, pos, amask, dmask, params, *, num_cls_tokens=1):
    """Pure-JAX replication of the PyTorch forward (for verification)."""
    wpos, bpos, wproj, bproj, mask_token, cls_pos_emb = params
    B, M = amask.shape
    D = wpos.shape[1]
    amask = amask.at[:, 0].set(False)
    fmask = amask & ~dmask
    fm = fmask.reshape(-1)
    dm = dmask.reshape(-1)
    embed = jnp.zeros((B * M, D), jnp.float32)
    vals_f = pos @ wpos + bpos + mask_token.reshape(-1)   # (N_f, D)
    vals_d = x @ wproj + bproj                            # (N_d, D)
    f_idx = jnp.nonzero(fm)[0]
    d_idx = jnp.nonzero(dm)[0]
    embed = embed.at[f_idx].set(vals_f)
    embed = embed.at[d_idx].set(vals_d)
    embed = embed.reshape(B, M, D)
    embed = embed.at[:, :num_cls_tokens].add(cls_pos_emb[None])
    return embed, fmask


if __name__ == "__main__":
    # Small shapes consistent with the module (D lane-dense so stores are
    # unmasked; M chosen so the token grid has 2 steps and exercises padding).
    B, M = 2, 40
    embed_dim = 128         # D
    encoder_embed = 64      # E
    patch_size = 4          # P2 = 16
    num_cls_tokens = 1
    P2 = patch_size ** 2

    key = jax.random.PRNGKey(0)
    (k_am, k_dm, k_wp, k_bp, k_wj, k_bj, k_mt, k_cp, k_x,
     k_pos) = jax.random.split(key, 10)

    wpos = jax.random.normal(k_wp, (P2, embed_dim), jnp.float32) * 0.05
    bpos = jax.random.normal(k_bp, (embed_dim,), jnp.float32) * 0.05
    wproj = jax.random.normal(k_wj, (encoder_embed, embed_dim), jnp.float32) * 0.05
    bproj = jax.random.normal(k_bj, (embed_dim,), jnp.float32) * 0.05
    mask_token = jax.random.normal(k_mt, (1, embed_dim), jnp.float32) * 1e-4
    cls_pos_emb = jax.random.normal(k_cp, (num_cls_tokens, embed_dim),
                                    jnp.float32) * 1e-4
    params = (wpos, bpos, wproj, bproj, mask_token, cls_pos_emb)

    # masks (amask partially False to exercise the zero / neither-mask path)
    amask = jax.random.bernoulli(k_am, 0.8, (B, M))
    dmask = jax.random.bernoulli(k_dm, 0.5, (B, M))
    fmask_tmp = amask.at[:, 0].set(False) & ~dmask
    n_d = int(dmask.sum())
    n_f = int(fmask_tmp.sum())

    # ragged inputs exactly as the PyTorch forward consumes them
    x = jax.random.normal(k_x, (n_d, encoder_embed), jnp.float32)
    pos = jax.random.normal(k_pos, (n_f, P2), jnp.float32)

    embed_ref, fmask_ref = _reference(
        x, pos, amask, dmask, params, num_cls_tokens=num_cls_tokens)

    # Default (perf) path: bf16 big contractions, f32 bias path, f32 output.
    embed, fmask = dpx_mae_decoder_embed(
        x, pos, amask, dmask, params, num_cls_tokens=num_cls_tokens)
    embed = jax.block_until_ready(embed)
    assert embed.shape == (B, M, embed_dim)
    assert fmask.shape == (B, M) and fmask.dtype == jnp.bool_
    assert bool(jnp.array_equal(fmask, fmask_ref))
    assert bool(jnp.allclose(embed, embed_ref, rtol=2e-2, atol=2e-2))

    # Full-f32 compute path: tight tolerance.
    embed_f32, _ = dpx_mae_decoder_embed(
        x, pos, amask, dmask, params, num_cls_tokens=num_cls_tokens,
        compute_dtype=jnp.float32)
    embed_f32 = jax.block_until_ready(embed_f32)
    assert bool(jnp.allclose(embed_f32, embed_ref, rtol=1e-3, atol=1e-3))

    # bf16 output path (for bf16 decoders): halves the writeback stream.
    embed_bf16, _ = dpx_mae_decoder_embed(
        x, pos, amask, dmask, params, num_cls_tokens=num_cls_tokens,
        out_dtype=jnp.bfloat16)
    embed_bf16 = jax.block_until_ready(embed_bf16)
    assert embed_bf16.dtype == jnp.bfloat16
    assert bool(jnp.allclose(embed_bf16.astype(jnp.float32), embed_ref,
                             rtol=3e-2, atol=3e-2))

    print("KERNEL_OK")
</pallas_src>

<mosaic_0001>
module attributes {stable_mosaic.version = 11 : i64} {
  func.func @_embedder_kernel(%arg0: i32, %arg1: memref<48x16xbf16, #tpu.memory_space<vmem>>, %arg2: memref<48x64xbf16, #tpu.memory_space<vmem>>, %arg3: memref<48x3xf32, #tpu.memory_space<vmem>>, %arg4: memref<16x128xbf16, #tpu.memory_space<vmem>>, %arg5: memref<64x128xbf16, #tpu.memory_space<vmem>>, %arg6: memref<3x128xf32, #tpu.memory_space<vmem>>, %arg7: memref<48x128xf32, #tpu.memory_space<vmem>>) attributes {dimension_semantics = [#tpu.dimension_semantics<parallel>], iteration_bounds = array<i64: 2>, scalar_prefetch = 0 : i64, scratch_operands = 0 : i64, tpu.core_type = #tpu.core_type<tc>, window_params = [{transform_indices = @transform_0, window_bounds = array<i64: 48, 16>}, {transform_indices = @transform_1, window_bounds = array<i64: 48, 64>}, {transform_indices = @transform_2, window_bounds = array<i64: 48, 3>}, {pipeline_mode = #tpu.pipeline_mode<synchronous>, transform_indices = @transform_3, window_bounds = array<i64: 16, 128>}, {pipeline_mode = #tpu.pipeline_mode<synchronous>, transform_indices = @transform_4, window_bounds = array<i64: 64, 128>}, {pipeline_mode = #tpu.pipeline_mode<synchronous>, transform_indices = @transform_5, window_bounds = array<i64: 3, 128>}, {transform_indices = @transform_6, window_bounds = array<i64: 48, 128>}]} {
    %c0 = arith.constant 0 : index
    %c0_0 = arith.constant 0 : index
    %0 = vector.load %arg1[%c0, %c0_0] : memref<48x16xbf16, #tpu.memory_space<vmem>>, vector<48x16xbf16>
    %c0_1 = arith.constant 0 : index
    %c0_2 = arith.constant 0 : index
    %1 = vector.load %arg4[%c0_1, %c0_2] : memref<16x128xbf16, #tpu.memory_space<vmem>>, vector<16x128xbf16>
    %cst = arith.constant dense<0.000000e+00> : vector<48x128xf32>
    %2 = tpu.matmul %0, %1, %cst {dimension_numbers = #tpu.dot_dimension_numbers<[1], [0], [0], [1], [0, 0, 1, 1], [], []>} : vector<48x16xbf16>, vector<16x128xbf16>, vector<48x128xf32> -> vector<48x128xf32>
    %c0_3 = arith.constant 0 : index
    %c0_4 = arith.constant 0 : index
    %3 = vector.load %arg2[%c0_3, %c0_4] : memref<48x64xbf16, #tpu.memory_space<vmem>>, vector<48x64xbf16>
    %c0_5 = arith.constant 0 : index
    %c0_6 = arith.constant 0 : index
    %4 = vector.load %arg5[%c0_5, %c0_6] : memref<64x128xbf16, #tpu.memory_space<vmem>>, vector<64x128xbf16>
    %cst_7 = arith.constant dense<0.000000e+00> : vector<48x128xf32>
    %5 = tpu.matmul %3, %4, %cst_7 {dimension_numbers = #tpu.dot_dimension_numbers<[1], [0], [0], [1], [0, 0, 1, 1], [], []>} : vector<48x64xbf16>, vector<64x128xbf16>, vector<48x128xf32> -> vector<48x128xf32>
    %6 = arith.addf %2, %5 : vector<48x128xf32>
    %c0_8 = arith.constant 0 : index
    %c0_9 = arith.constant 0 : index
    %7 = vector.load %arg3[%c0_8, %c0_9] : memref<48x3xf32, #tpu.memory_space<vmem>>, vector<48x3xf32>
    %c0_10 = arith.constant 0 : index
    %c0_11 = arith.constant 0 : index
    %8 = vector.load %arg6[%c0_10, %c0_11] : memref<3x128xf32, #tpu.memory_space<vmem>>, vector<3x128xf32>
    %cst_12 = arith.constant dense<0.000000e+00> : vector<48x128xf32>
    %9 = tpu.matmul %7, %8, %cst_12 {dimension_numbers = #tpu.dot_dimension_numbers<[1], [0], [0], [1], [0, 0, 1, 1], [], []>} : vector<48x3xf32>, vector<3x128xf32>, vector<48x128xf32> -> vector<48x128xf32>
    %10 = arith.addf %6, %9 : vector<48x128xf32>
    %c0_13 = arith.constant 0 : index
    %c0_14 = arith.constant 0 : index
    %11 = vector.load %arg7[%c0_13, %c0_14] : memref<48x128xf32, #tpu.memory_space<vmem>>, vector<48x128xf32>
    tpu.vector_store %arg7[%c0_13, %c0_14], %10 {strides = array<i32>} : memref<48x128xf32, #tpu.memory_space<vmem>>, vector<48x128xf32>,
    return
  }
  func.func @transform_0(%arg0: i32) -> (i32, i32) {
    %c0_i32 = arith.constant 0 : i32
    %c0_i32_0 = arith.constant 0 : i32
    return %arg0, %c0_i32 : i32, i32
  }
  func.func @transform_1(%arg0: i32) -> (i32, i32) {
    %c0_i32 = arith.constant 0 : i32
    %c0_i32_0 = arith.constant 0 : i32
    return %arg0, %c0_i32 : i32, i32
  }
  func.func @transform_2(%arg0: i32) -> (i32, i32) {
    %c0_i32 = arith.constant 0 : i32
    %c0_i32_0 = arith.constant 0 : i32
    return %arg0, %c0_i32 : i32, i32
  }
  func.func @transform_3(%arg0: i32) -> (i32, i32) {
    %c0_i32 = arith.constant 0 : i32
    %c0_i32_0 = arith.constant 0 : i32
    %c0_i32_1 = arith.constant 0 : i32
    return %c0_i32, %c0_i32_0 : i32, i32
  }
  func.func @transform_4(%arg0: i32) -> (i32, i32) {
    %c0_i32 = arith.constant 0 : i32
    %c0_i32_0 = arith.constant 0 : i32
    %c0_i32_1 = arith.constant 0 : i32
    return %c0_i32, %c0_i32_0 : i32, i32
  }
  func.func @transform_5(%arg0: i32) -> (i32, i32) {
    %c0_i32 = arith.constant 0 : i32
    %c0_i32_0 = arith.constant 0 : i32
    %c0_i32_1 = arith.constant 0 : i32
    return %c0_i32, %c0_i32_0 : i32, i32
  }
  func.func @transform_6(%arg0: i32) -> (i32, i32) {
    %c0_i32 = arith.constant 0 : i32
    %c0_i32_0 = arith.constant 0 : i32
    return %arg0, %c0_i32 : i32, i32
  }
}

module attributes {stable_mosaic.version = 11 : i64} {
  func.func @_embedder_kernel(%arg0: i32, %arg1: memref<48x16xbf16, #tpu.memory_space<vmem>>, %arg2: memref<48x64xbf16, #tpu.memory_space<vmem>>, %arg3: memref<48x3xf32, #tpu.memory_space<vmem>>, %arg4: memref<16x128xbf16, #tpu.memory_space<vmem>>, %arg5: memref<64x128xbf16, #tpu.memory_space<vmem>>, %arg6: memref<3x128xf32, #tpu.memory_space<vmem>>, %arg7: memref<48x128xf32, #tpu.memory_space<vmem>>) attributes {dimension_semantics = [#tpu.dimension_semantics<parallel>], iteration_bounds = array<i64: 2>, scalar_prefetch = 0 : i64, scratch_operands = 0 : i64, tpu.core_type = #tpu.core_type<tc>, window_params = [{transform_indices = @transform_0, window_bounds = array<i64: 48, 16>}, {transform_indices = @transform_1, window_bounds = array<i64: 48, 64>}, {transform_indices = @transform_2, window_bounds = array<i64: 48, 3>}, {pipeline_mode = #tpu.pipeline_mode<synchronous>, transform_indices = @transform_3, window_bounds = array<i64: 16, 128>}, {pipeline_mode = #tpu.pipeline_mode<synchronous>, transform_indices = @transform_4, window_bounds = array<i64: 64, 128>}, {pipeline_mode = #tpu.pipeline_mode<synchronous>, transform_indices = @transform_5, window_bounds = array<i64: 3, 128>}, {transform_indices = @transform_6, window_bounds = array<i64: 48, 128>}]} {
    %c0 = arith.constant 0 : index
    %c0_0 = arith.constant 0 : index
    %0 = vector.load %arg1[%c0, %c0_0] : memref<48x16xbf16, #tpu.memory_space<vmem>>, vector<48x16xbf16>
    %c0_1 = arith.constant 0 : index
    %c0_2 = arith.constant 0 : index
    %1 = vector.load %arg4[%c0_1, %c0_2] : memref<16x128xbf16, #tpu.memory_space<vmem>>, vector<16x128xbf16>
    %cst = arith.constant dense<0.000000e+00> : vector<48x128xf32>
    %2 = tpu.matmul %0, %1, %cst {dimension_numbers = #tpu.dot_dimension_numbers<[1], [0], [0], [1], [0, 0, 1, 1], [], []>} : vector<48x16xbf16>, vector<16x128xbf16>, vector<48x128xf32> -> vector<48x128xf32>
    %c0_3 = arith.constant 0 : index
    %c0_4 = arith.constant 0 : index
    %3 = vector.load %arg2[%c0_3, %c0_4] : memref<48x64xbf16, #tpu.memory_space<vmem>>, vector<48x64xbf16>
    %c0_5 = arith.constant 0 : index
    %c0_6 = arith.constant 0 : index
    %4 = vector.load %arg5[%c0_5, %c0_6] : memref<64x128xbf16, #tpu.memory_space<vmem>>, vector<64x128xbf16>
    %cst_7 = arith.constant dense<0.000000e+00> : vector<48x128xf32>
    %5 = tpu.matmul %3, %4, %cst_7 {dimension_numbers = #tpu.dot_dimension_numbers<[1], [0], [0], [1], [0, 0, 1, 1], [], []>} : vector<48x64xbf16>, vector<64x128xbf16>, vector<48x128xf32> -> vector<48x128xf32>
    %6 = arith.addf %2, %5 : vector<48x128xf32>
    %c0_8 = arith.constant 0 : index
    %c0_9 = arith.constant 0 : index
    %7 = vector.load %arg3[%c0_8, %c0_9] : memref<48x3xf32, #tpu.memory_space<vmem>>, vector<48x3xf32>
    %c0_10 = arith.constant 0 : index
    %c0_11 = arith.constant 0 : index
    %8 = vector.load %arg6[%c0_10, %c0_11] : memref<3x128xf32, #tpu.memory_space<vmem>>, vector<3x128xf32>
    %cst_12 = arith.constant dense<0.000000e+00> : vector<48x128xf32>
    %9 = tpu.matmul %7, %8, %cst_12 {dimension_numbers = #tpu.dot_dimension_numbers<[1], [0], [0], [1], [0, 0, 1, 1], [], []>} : vector<48x3xf32>, vector<3x128xf32>, vector<48x128xf32> -> vector<48x128xf32>
    %10 = arith.addf %6, %9 : vector<48x128xf32>
    %c0_13 = arith.constant 0 : index
    %c0_14 = arith.constant 0 : index
    %11 = vector.load %arg7[%c0_13, %c0_14] : memref<48x128xf32, #tpu.memory_space<vmem>>, vector<48x128xf32>
    tpu.vector_store %arg7[%c0_13, %c0_14], %10 {strides = array<i32>} : memref<48x128xf32, #tpu.memory_space<vmem>>, vector<48x128xf32>,
    return
  }
  func.func @transform_0(%arg0: i32) -> (i32, i32) {
    %c0_i32 = arith.constant 0 : i32
    %c0_i32_0 = arith.constant 0 : i32
    return %arg0, %c0_i32 : i32, i32
  }
  func.func @transform_1(%arg0: i32) -> (i32, i32) {
    %c0_i32 = arith.constant 0 : i32
    %c0_i32_0 = arith.constant 0 : i32
    return %arg0, %c0_i32 : i32, i32
  }
  func.func @transform_2(%arg0: i32) -> (i32, i32) {
    %c0_i32 = arith.constant 0 : i32
    %c0_i32_0 = arith.constant 0 : i32
    return %arg0, %c0_i32 : i32, i32
  }
  func.func @transform_3(%arg0: i32) -> (i32, i32) {
    %c0_i32 = arith.constant 0 : i32
    %c0_i32_0 = arith.constant 0 : i32
    %c0_i32_1 = arith.constant 0 : i32
    return %c0_i32, %c0_i32_0 : i32, i32
  }
  func.func @transform_4(%arg0: i32) -> (i32, i32) {
    %c0_i32 = arith.constant 0 : i32
    %c0_i32_0 = arith.constant 0 : i32
    %c0_i32_1 = arith.constant 0 : i32
    return %c0_i32, %c0_i32_0 : i32, i32
  }
  func.func @transform_5(%arg0: i32) -> (i32, i32) {
    %c0_i32 = arith.constant 0 : i32
    %c0_i32_0 = arith.constant 0 : i32
    %c0_i32_1 = arith.constant 0 : i32
    return %c0_i32, %c0_i32_0 : i32, i32
  }
  func.func @transform_6(%arg0: i32) -> (i32, i32) {
    %c0_i32 = arith.constant 0 : i32
    %c0_i32_0 = arith.constant 0 : i32
    return %arg0, %c0_i32 : i32, i32
  }
}

</mosaic_0001>

<bundles_post_ra>
// kernel: tpu_custom_call.1
= control target key start
LH: loop header
LB: loop body
LE: loop exit
PB: predicated region body
PF: predicated region fallthrough
CT: control target
= control target key end

     0   :  { %11 = vsyncpa [#allocation3], 0  ;;  %s1158_s0 = inlined_call_operand.vmem [shape: bf16[96,16], index: 0, kind: input, shape index: {}]   ;;  %s1159_s1 = inlined_call_operand.vmem [shape: bf16[96,64], index: 1, kind: input, shape index: {}]   ;;  %s1160_s2 = inlined_call_operand.vmem [shape: f32[96,3], index: 2, kind: input, shape index: {}]   ;;  %s1161_s3 = inlined_call_operand.vmem [shape: bf16[16,128], index: 3, kind: input, shape index: {}]   ;;  %s1162_s4 = inlined_call_operand.vmem [shape: bf16[64,128], index: 4, kind: input, shape index: {}]   ;;  %s1163_s5 = inlined_call_operand.vmem [shape: f32[3,128], index: 5, kind: input, shape index: {}]   ;;  %s1164_s6 = inlined_call_operand.hbm [shape: f32[96,128], index: 6, kind: output, shape index: {}]  }
   0x1   :  { %13 = vsyncpa [#allocation3 + $0x1], 0  ;;  %s1014_s21 = smov 0   ;;  %s1016_s22 = smov 0  }
   0x2   :  { %s1018_s23 = smov 0   ;;  %s1020_s24 = smov 0  }
   0x3 LB: > { %s1035_s25 = sadd.s32 4294967295, %s972_s24   ;;  %s751_s26 = sadd.s32 4294967294, %s972_s24   ;;  %s972_s24 = sphi %s1020_s24, %s1170_s24   ;;  %s968_s23 = sphi %s1018_s23, %s1169_s23   ;;  %s964_s22 = sphi %s1016_s22, %s1168_s22   ;;  %s960_s21 = sphi %s1014_s21, %s1167_s21  }
   0x4   : > { %s1039_s27 = sadd.s32 1, %s972_s24   ;;  %s167_s28 = sadd.s32 1, %s968_s23 }
   0x5   : > { %s164_s29 = ssub.s32 %s972_s24, %s1039_s27  ;;  %p177_p0 = scmp.ne.s32.totalorder %s968_s23, %s964_s22 }
   0x6   : > { %p165_p1 = scmp.eq.s32.totalorder %s164_s29, 0  ;;  %p178_p2 = scmp.eq.s32.totalorder %s1035_s25, 1 }
   0x7   : > { %p183_p3 = scmp.ne.s32.totalorder %s964_s22, %s960_s21  ;;  %p184_p4 = scmp.eq.s32.totalorder %s751_s26, 1 }
   0x8   : > { %s1050_s30 = scalar_select %p165_p1, %s968_s23, %s167_s28  }
   0x9   : > { %p1052_p5 = por %p178_p2, %p177_p0  ;;  %p1056_p6 = por %p184_p4, %p183_p3 }
   0xa   : > { %p754_p7 = scmp.ge.s32.totalorder %s972_s24, 1  ;;  %p238_p8 = scmp.lt.s32.totalorder %s972_s24, 3 }
   0xc   : > { %p239_p9 = pnand %p754_p7, %p238_p8 }
   0xd   : > { %v899_v0 = vld [vmem:[%s1162_s4] sm:$0xff] (!%p239_p9)   ;;  %v974_v1 = vmov (!%p239_p9), 0.0   ;;  %v900_v2 = vld [vmem:[%s1162_s4 + $0x8] sm:$0xff] (!%p239_p9)   ;;  %vm975_vm0 = vmmov (!%p239_p9), 0   ;;  %vm540_vm1 = vcmask (!%p239_p9), 1042432   ;;  %s278_s17 = smul.u32 (!%p239_p9), 6, %s1035_s25 }
   0xe   : > { %242 = sbr.rel (%p239_p9) target bundleno = 287 (0x11f), region = 44  ;;  %804 = vmatprep.subr.bf16.mxu0 (!%p239_p9), %v974_v1  ;;  %824 = vmatprep.subr.bf16.mxu1 (!%p239_p9), %v974_v1  ;;  %v901_v3 = vld [vmem:[%s1161_s3] sm:$0xff] (!%p239_p9)   ;;  %v902_v5 = vld [vmem:[%s1162_s4 + $0x10] sm:$0xff] (!%p239_p9)   ;;  %v904_v6 = vld [vmem:[%s1162_s4 + $0x18] sm:$0xff] (!%p239_p9)   ;;  %vm447_vm2 = vcmask (!%p239_p9), 130048   ;;  %vm359_vm3 = vcmask (!%p239_p9), 523264  }
   0xf   : > { %805 = vmatpush3.bf16.msra.mxu0 (!%p239_p9), %v899_v0  ;;  %826 = vmatprep.mubr.msk.bf16.mxu1 (!%p239_p9), %vm975_vm0, %v974_v1  ;;  %v520_v4 = vld [vmem:[%s1163_s5] sm:$0x7] (!%p239_p9)  ;;  %p279_p10 = scmp.lt.s32.totalorder (!%p239_p9), %s278_s17, 11  ;;  %vm521_vm4 = vcmask (!%p239_p9), 23552   ;;  %s785_s26 = smul.u32 (!%p239_p9), 768, %s1035_s25 }
  0x10   : > { %806 = vmatprep.subr.bf16.mxu0 (!%p239_p9), %v974_v1  ;;  %812 = vmatprep.mubr.msk.bf16.mxu0 (!%p239_p9), %vm975_vm0, %v974_v1  ;;  %s976_s12 = smov (!%p239_p9), [#allocation2]  }
  0x11   : > { %825 = vmatpush3.bf16.msra.mxu1 (!%p239_p9), %v901_v3 }
  0x12   : > { %838 = vmatprep.subr.msk.mxu1 (!%p239_p9), %vm540_vm1, %v520_v4 }
  0x13   : > { %807 = vmatpush3.bf16.msra.mxu0 (!%p239_p9), %v900_v2 }
  0x14   : > { %808 = vmatprep.subr.bf16.mxu0 (!%p239_p9), %v974_v1 }
  0x15   : > { %s1172_s17 = smov (!%p279_p10, %s278_s17), 11 }
  0x16   : > { %s755_s20 = sshll.u32 %s1172_s17, 2  ;;  %s757_s14 = sshll.u32 %s1172_s17, 3 }
  0x17   : > { %809 = vmatpush3.bf16.msra.mxu0 %v902_v5  ;;  %s282_s10 = scalar_lea.vmem %s1158_s0, %s755_s20  ;;  %s288_s13 = scalar_lea.vmem %s1159_s1, %s755_s20 }
  0x18   : > { %810 = vmatprep.subr.bf16.mxu0 %v974_v1  ;;  %v903_v7 = vld [vmem:[%s282_s10] sm:$0xff]   ;;  %v906_v9 = vld [vmem:[%s282_s10 + $0x8] sm:$0xff]   ;;  %s294_s18 = scalar_lea.vmem %s1160_s2, %s757_s14  ;;  %v908_v11 = vld [vmem:[%s282_s10 + $0x10] sm:$0xff]   ;;  %s275_s17 = sand.u32 1, %s964_s22  }
  0x19   : > { %v905_v8 = vld [vmem:[%s288_s13] sm:$0xff]   ;;  %827 = vmatmul.mubr.msk.bf16.vlgmr.msra.gmra.mrb[0].mxu1 %vm447_vm2, %v903_v7  ;;  %v907_v10 = vld [vmem:[%s288_s13 + $0x8] sm:$0xff]   ;;  %v909_v13 = vld [vmem:[%s288_s13 + $0x10] sm:$0xff]   ;;  %s855_s19 = smul.u32 48, %s275_s17  ;;  %s1113_s10 = scalar_lea.hbm %s1164_s6, %s785_s26 }
  0x1a   : > { %839 = vmatpush3.msk.msra.mxu1 %vm540_vm1, %v520_v4  ;;  %830 = vmatprep.mubr.msk.bf16.mxu1 %vm975_vm0, %v974_v1  ;;  %v514_v12 = vld [vmem:[%s294_s18] sm:$0xff]  ;;  %v515_v14 = vld [vmem:[%s294_s18 + $0x8] sm:$0xff]  ;;  %v516_v15 = vld [vmem:[%s294_s18 + $0x10] sm:$0xff]  ;;  %s1117_s25 = scalar_lea.sflag [#allocation3], %s275_s17  ;;  %s914_s13 = sshll.u32 %s976_s12, 4  ;;  %s915_s13 = int_to_ptr.vmem [resolvable:$false] %s914_s13 }
  0x1b   : > { %811 = vmatpush3.bf16.msra.mxu0 %v904_v6  ;;  %v517_v16 = vld [vmem:[%s294_s18 + $0x18] sm:$0xff]  ;;  %v518_v17 = vld [vmem:[%s294_s18 + $0x20] sm:$0xff]  ;;  %v519_v18 = vld [vmem:[%s294_s18 + $0x28] sm:$0xff]  ;;  %s277_s20 = scalar_lea.vmem [#allocation2], %s855_s19  ;;  %s916_s14 = scalar_lea.vmem %s915_s13, 1536 }
  0x1c   : > { %s665_s28 = sshll.u32 %s277_s20, 4  ;;  %s1108_s28 = int_to_ptr.vmem [resolvable:$true] %s665_s28 }
  0x1d   : > { %s910_s11 = scalar_lea.vmem %s1108_s28, 768  ;;  %p917_p0 = scmp.lt.s32.totalorder %s1108_s28, %s915_s13 }
  0x1e   : > { %813 = vmatmul.mubr.msk.bf16.vlgmr.msra.gmra.mrb[0].mxu0 %vm359_vm3, %v905_v8  ;;  %p911_p11 = scmp.ne.s32.totalorder %s1108_s28, %s910_s11  ;;  %p918_p1 = scmp.lt.s32.totalorder %s916_s14, %s910_s11 }
  0x1f   : > { %816 = vmatprep.mubr.msk.bf16.mxu0 %vm975_vm0, %v974_v1 }
  0x20   : > { %p912_p12 = pnand %p911_p11, %p1052_p5  ;;  %p919_p2 = por %p918_p1, %p917_p0 }
  0x21   : > { %831 = vmatmul.mubr.msk.bf16.gmra.mrb[4].mxu1 %vm447_vm2, %v906_v9 }
  0x22   : > { %834 = vmatprep.mubr.msk.bf16.mxu1 %vm975_vm0, %v974_v1  ;;  %p913_p13 = pneg %p912_p12 }
  0x24   : > { %p920_p3 = pnand %p919_p2, %p913_p13 }
  0x26   : > { %817 = vmatmul.mubr.msk.bf16.gmra.mrb[4].mxu0 %vm359_vm3, %v907_v10 }
  0x27   : > { %820 = vmatprep.mubr.msk.bf16.mxu0 %vm975_vm0, %v974_v1 }
  0x29   : > { %835 = vmatmul.mubr.msk.bf16.gmra.mrb[8].mxu1 %vm447_vm2, %v908_v11 }
  0x2a   : > { %840 = vmatprep.mubr.msk.f32.mxu1 %vm521_vm4, %v514_v12 }
  0x2e   : > { %821 = vmatmul.mubr.msk.bf16.gmra.mrb[8].mxu0 %vm359_vm3, %v909_v13 }
  0x31   : > { %841 = vmatmul.mubr.msk.f32.vlgmr.msra.gmra.mrb[12].mxu1 %vm521_vm4, %v515_v14 }
  0x32   : > { %843 = vmatprep.mubr.msk.f32.mxu1 %vm521_vm4, %v516_v15 }
  0x35   : > { %844 = vmatmul.mubr.msk.f32.gmra.mrb[14].mxu1 %vm521_vm4, %v517_v16 }
  0x36   : > { %846 = vmatprep.mubr.msk.f32.mxu1 %vm521_vm4, %v518_v17 }
  0x39   : > { %847 = vmatmul.mubr.msk.f32.gmra.mrb[16].mxu1 %vm521_vm4, %v519_v18 }
  0xec   : > { %v491_v19 = vpop.f32.mrb[0].mxu1 }
  0xed   : > { %v828_v20 = vpop.f32.mrb[1].mxu1 }
  0xee   : > { %v494_v21 = vpop.f32.mrb[2].mxu1 }
  0xef   : > { %v829_v22 = vpop.f32.mrb[3].mxu1 }
  0xf1   : > { %v403_v23 = vpop.f32.mrb[0].mxu0 }
  0xf2   : > { %v492_v24 = vadd.f32 %v491_v19, %v403_v23  ;;  %v814_v25 = vpop.f32.mrb[1].mxu0 }
  0xf3   : > { %v406_v26 = vpop.f32.mrb[2].mxu0 }
  0xf4   : > { %v495_v27 = vadd.f32 %v494_v21, %v406_v26  ;;  %v815_v28 = vpop.f32.mrb[3].mxu0  ;;  %v499_v29 = vpop.f32.mrb[4].mxu1 }
  0xf5   : > { %v832_v30 = vpop.f32.mrb[5].mxu1 }
  0xf6   : > { %v502_v31 = vpop.f32.mrb[6].mxu1 }
  0xf7   : > { %v833_v32 = vpop.f32.mrb[7].mxu1 }
  0xf9   : > { %v411_v33 = vpop.f32.mrb[4].mxu0 }
  0xfa   : > { %v500_v34 = vadd.f32 %v499_v29, %v411_v33  ;;  %v818_v35 = vpop.f32.mrb[5].mxu0 }
  0xfb   : > { %v414_v36 = vpop.f32.mrb[6].mxu0 }
  0xfc   : > { %v503_v37 = vadd.f32 %v502_v31, %v414_v36  ;;  %v819_v38 = vpop.f32.mrb[7].mxu0  ;;  %v507_v39 = vpop.f32.mrb[8].mxu1 }
  0xfd   : > { %v836_v40 = vpop.f32.mrb[9].mxu1 }
  0xfe   : > { %v510_v41 = vpop.f32.mrb[10].mxu1 }
  0xff   : > { %v837_v42 = vpop.f32.mrb[11].mxu1 }
 0x101   : > { %v419_v43 = vpop.f32.mrb[8].mxu0 }
 0x102   : > { %v508_v44 = vadd.f32 %v507_v39, %v419_v43  ;;  %v822_v45 = vpop.f32.mrb[9].mxu0 }
 0x103   : > { %v422_v46 = vpop.f32.mrb[10].mxu0 }
 0x104   : > { %v511_v47 = vadd.f32 %v510_v41, %v422_v46  ;;  %v823_v48 = vpop.f32.mrb[11].mxu0  ;;  %v842_v49 = vpop.f32.mrb[12].mxu1 }
 0x105   : > { %v640_v50 = vadd.f32 %v842_v49, %v495_v27  ;;  %v610_v51 = vpop.f32.mrb[13].mxu1 }
 0x106   : > { %v639_v52 = vadd.f32 %v610_v51, %v492_v24 }
 0x107   : > { %646 = vst [vmem:[%s277_s20 + $0x8] sm:$0xff] %v640_v50 }
 0x108   : > { %645 = vst [vmem:[%s277_s20] sm:$0xff] %v639_v52  ;;  %v845_v53 = vpop.f32.mrb[14].mxu1 }
 0x109   : > { %v642_v54 = vadd.f32 %v845_v53, %v503_v37  ;;  %v620_v55 = vpop.f32.mrb[15].mxu1 }
 0x10a   : > { %v641_v56 = vadd.f32 %v620_v55, %v500_v34 }
 0x10b   : > { %648 = vst [vmem:[%s277_s20 + $0x18] sm:$0xff] %v642_v54 }
 0x10c   : > { %647 = vst [vmem:[%s277_s20 + $0x10] sm:$0xff] %v641_v56  ;;  %v848_v57 = vpop.f32.mrb[16].mxu1 }
 0x10d   : > { %v644_v58 = vadd.f32 %v848_v57, %v511_v47  ;;  %v630_v59 = vpop.f32.mrb[17].mxu1 }
 0x10e   : > { %v643_v60 = vadd.f32 %v630_v59, %v508_v44 }
 0x10f   : > { %650 = vst [vmem:[%s277_s20 + $0x28] sm:$0xff] %v644_v58 }
 0x110   : > { %649 = vst [vmem:[%s277_s20 + $0x20] sm:$0xff] %v643_v60 }
 0x111   : > { %923 = shalt.err (!%p920_p3)
}
 0x112   : > { %s924_s15 = scalar_lea.hbm %s1113_s10, 768  ;;  %s928_s17 = scalar_lea.hbm %s1164_s6, 1536 }
 0x113   : > { %p925_p4 = scmp.ne.s32.totalorder %s1113_s10, %s924_s15  ;;  %p929_p9 = scmp.lt.u32.totalorder %s1113_s10, %s1164_s6 }
 0x114   : > { %p930_p10 = scmp.lt.u32.totalorder %s928_s17, %s924_s15  ;;  %p932_p12 = scmp.lt.u32.totalorder %s924_s15, %s1113_s10 }
 0x115   : > { %p926_p7 = pnand %p925_p4, %p1052_p5 }
 0x116   : > { %p931_p11 = por %p930_p10, %p929_p9 }
 0x117   : > { %p927_p8 = pneg %p926_p7 }
 0x118   : > { %p933_p13 = por %p932_p12, %p931_p11 }
 0x11a   : > { %p934_p0 = pnand %p933_p13, %p927_p8 }
 0x11c   : > { %937 = shalt.err (!%p934_p0)
}
 0x11d   : > { %s977_s26 = smov 128   ;;  %s978_s29 = smov 8  }
 0x11e   : > { %856 = dma.vmem_to_hbm [thread:$0]  (%p1052_p5), %s1108_s28, 768, %s1113_s10, %s1117_s25, %s977_s26, %s977_s26, %s978_s29  }
 0x11f PF: > { %p862_p1 = scmp.ge.s32.totalorder %s972_s24, 2  ;;  %s680_s9 = sand.u32 1, %s960_s21  }
 0x120   : > { %s681_s11 = scalar_lea.sflag [#allocation3], %s680_s9 }
 0x121   : > { %p859_p2 = pnand %p862_p1, %p1056_p6 }
 0x123   : > { %955 = dma.done.wait (!%p859_p2), %s681_s11, 768  }
 0x124   : > { %957 = vsyncadd (!%p859_p2), %s681_s11, 4294966528  ;;  %p16_p3 = scmp.ge.s32.totalorder %s1039_s27, 4   ;;  %s1167_s21 = smov %s964_s22 }
 0x125   : > { %s1168_s22 = smov %s968_s23  ;;  %s1169_s23 = smov %s1050_s30 }
 0x126   : > { %s1170_s24 = smov %s1039_s27  ;;  %18 = sbr.rel (!%p16_p3) target bundleno = 3 (0x3), region = 85 }
 0x12d   :  { %686 = vsyncpa [#allocation3], 1 }
 0x12e   :  { %688 = vsyncpa [#allocation3 + $0x1], 1 }

// kernel: tpu_custom_call.1
= control target key start
LH: loop header
LB: loop body
LE: loop exit
PB: predicated region body
PF: predicated region fallthrough
CT: control target
= control target key end

     0   :  { %11 = vsyncpa [#allocation3], 0  ;;  %s1158_s0 = inlined_call_operand.vmem [shape: bf16[96,16], index: 0, kind: input, shape index: {}]   ;;  %s1159_s1 = inlined_call_operand.vmem [shape: bf16[96,64], index: 1, kind: input, shape index: {}]   ;;  %s1160_s2 = inlined_call_operand.vmem [shape: f32[96,3], index: 2, kind: input, shape index: {}]   ;;  %s1161_s3 = inlined_call_operand.vmem [shape: bf16[16,128], index: 3, kind: input, shape index: {}]   ;;  %s1162_s4 = inlined_call_operand.vmem [shape: bf16[64,128], index: 4, kind: input, shape index: {}]   ;;  %s1163_s5 = inlined_call_operand.vmem [shape: f32[3,128], index: 5, kind: input, shape index: {}]   ;;  %s1164_s6 = inlined_call_operand.hbm [shape: f32[96,128], index: 6, kind: output, shape index: {}]  }
   0x1   :  { %13 = vsyncpa [#allocation3 + $0x1], 0  ;;  %s1014_s21 = smov 0   ;;  %s1016_s22 = smov 0  }
   0x2   :  { %s1018_s23 = smov 0   ;;  %s1020_s24 = smov 0  }
   0x3 LB: > { %s1035_s25 = sadd.s32 4294967295, %s972_s24   ;;  %s751_s26 = sadd.s32 4294967294, %s972_s24   ;;  %s972_s24 = sphi %s1020_s24, %s1170_s24   ;;  %s968_s23 = sphi %s1018_s23, %s1169_s23   ;;  %s964_s22 = sphi %s1016_s22, %s1168_s22   ;;  %s960_s21 = sphi %s1014_s21, %s1167_s21  }
   0x4   : > { %s1039_s27 = sadd.s32 1, %s972_s24   ;;  %s167_s28 = sadd.s32 1, %s968_s23 }
   0x5   : > { %s164_s29 = ssub.s32 %s972_s24, %s1039_s27  ;;  %p177_p0 = scmp.ne.s32.totalorder %s968_s23, %s964_s22 }
   0x6   : > { %p165_p1 = scmp.eq.s32.totalorder %s164_s29, 0  ;;  %p178_p2 = scmp.eq.s32.totalorder %s1035_s25, 1 }
   0x7   : > { %p183_p3 = scmp.ne.s32.totalorder %s964_s22, %s960_s21  ;;  %p184_p4 = scmp.eq.s32.totalorder %s751_s26, 1 }
   0x8   : > { %s1050_s30 = scalar_select %p165_p1, %s968_s23, %s167_s28  }
   0x9   : > { %p1052_p5 = por %p178_p2, %p177_p0  ;;  %p1056_p6 = por %p184_p4, %p183_p3 }
   0xa   : > { %p754_p7 = scmp.ge.s32.totalorder %s972_s24, 1  ;;  %p238_p8 = scmp.lt.s32.totalorder %s972_s24, 3 }
   0xc   : > { %p239_p9 = pnand %p754_p7, %p238_p8 }
   0xd   : > { %v899_v0 = vld [vmem:[%s1162_s4] sm:$0xff] (!%p239_p9)   ;;  %v974_v1 = vmov (!%p239_p9), 0.0   ;;  %v900_v2 = vld [vmem:[%s1162_s4 + $0x8] sm:$0xff] (!%p239_p9)   ;;  %vm975_vm0 = vmmov (!%p239_p9), 0   ;;  %vm540_vm1 = vcmask (!%p239_p9), 1042432   ;;  %s278_s17 = smul.u32 (!%p239_p9), 6, %s1035_s25 }
   0xe   : > { %242 = sbr.rel (%p239_p9) target bundleno = 287 (0x11f), region = 44  ;;  %804 = vmatprep.subr.bf16.mxu0 (!%p239_p9), %v974_v1  ;;  %824 = vmatprep.subr.bf16.mxu1 (!%p239_p9), %v974_v1  ;;  %v901_v3 = vld [vmem:[%s1161_s3] sm:$0xff] (!%p239_p9)   ;;  %v902_v5 = vld [vmem:[%s1162_s4 + $0x10] sm:$0xff] (!%p239_p9)   ;;  %v904_v6 = vld [vmem:[%s1162_s4 + $0x18] sm:$0xff] (!%p239_p9)   ;;  %vm447_vm2 = vcmask (!%p239_p9), 130048   ;;  %vm359_vm3 = vcmask (!%p239_p9), 523264  }
   0xf   : > { %805 = vmatpush3.bf16.msra.mxu0 (!%p239_p9), %v899_v0  ;;  %826 = vmatprep.mubr.msk.bf16.mxu1 (!%p239_p9), %vm975_vm0, %v974_v1  ;;  %v520_v4 = vld [vmem:[%s1163_s5] sm:$0x7] (!%p239_p9)  ;;  %p279_p10 = scmp.lt.s32.totalorder (!%p239_p9), %s278_s17, 11  ;;  %vm521_vm4 = vcmask (!%p239_p9), 23552   ;;  %s785_s26 = smul.u32 (!%p239_p9), 768, %s1035_s25 }
  0x10   : > { %806 = vmatprep.subr.bf16.mxu0 (!%p239_p9), %v974_v1  ;;  %812 = vmatprep.mubr.msk.bf16.mxu0 (!%p239_p9), %vm975_vm0, %v974_v1  ;;  %s976_s12 = smov (!%p239_p9), [#allocation2]  }
  0x11   : > { %825 = vmatpush3.bf16.msra.mxu1 (!%p239_p9), %v901_v3 }
  0x12   : > { %838 = vmatprep.subr.msk.mxu1 (!%p239_p9), %vm540_vm1, %v520_v4 }
  0x13   : > { %807 = vmatpush3.bf16.msra.mxu0 (!%p239_p9), %v900_v2 }
  0x14   : > { %808 = vmatprep.subr.bf16.mxu0 (!%p239_p9), %v974_v1 }
  0x15   : > { %s1172_s17 = smov (!%p279_p10, %s278_s17), 11 }
  0x16   : > { %s755_s20 = sshll.u32 %s1172_s17, 2  ;;  %s757_s14 = sshll.u32 %s1172_s17, 3 }
  0x17   : > { %809 = vmatpush3.bf16.msra.mxu0 %v902_v5  ;;  %s282_s10 = scalar_lea.vmem %s1158_s0, %s755_s20  ;;  %s288_s13 = scalar_lea.vmem %s1159_s1, %s755_s20 }
  0x18   : > { %810 = vmatprep.subr.bf16.mxu0 %v974_v1  ;;  %v903_v7 = vld [vmem:[%s282_s10] sm:$0xff]   ;;  %v906_v9 = vld [vmem:[%s282_s10 + $0x8] sm:$0xff]   ;;  %s294_s18 = scalar_lea.vmem %s1160_s2, %s757_s14  ;;  %v908_v11 = vld [vmem:[%s282_s10 + $0x10] sm:$0xff]   ;;  %s275_s17 = sand.u32 1, %s964_s22  }
  0x19   : > { %v905_v8 = vld [vmem:[%s288_s13] sm:$0xff]   ;;  %827 = vmatmul.mubr.msk.bf16.vlgmr.msra.gmra.mrb[0].mxu1 %vm447_vm2, %v903_v7  ;;  %v907_v10 = vld [vmem:[%s288_s13 + $0x8] sm:$0xff]   ;;  %v909_v13 = vld [vmem:[%s288_s13 + $0x10] sm:$0xff]   ;;  %s855_s19 = smul.u32 48, %s275_s17  ;;  %s1113_s10 = scalar_lea.hbm %s1164_s6, %s785_s26 }
  0x1a   : > { %839 = vmatpush3.msk.msra.mxu1 %vm540_vm1, %v520_v4  ;;  %830 = vmatprep.mubr.msk.bf16.mxu1 %vm975_vm0, %v974_v1  ;;  %v514_v12 = vld [vmem:[%s294_s18] sm:$0xff]  ;;  %v515_v14 = vld [vmem:[%s294_s18 + $0x8] sm:$0xff]  ;;  %v516_v15 = vld [vmem:[%s294_s18 + $0x10] sm:$0xff]  ;;  %s1117_s25 = scalar_lea.sflag [#allocation3], %s275_s17  ;;  %s914_s13 = sshll.u32 %s976_s12, 4  ;;  %s915_s13 = int_to_ptr.vmem [resolvable:$false] %s914_s13 }
  0x1b   : > { %811 = vmatpush3.bf16.msra.mxu0 %v904_v6  ;;  %v517_v16 = vld [vmem:[%s294_s18 + $0x18] sm:$0xff]  ;;  %v518_v17 = vld [vmem:[%s294_s18 + $0x20] sm:$0xff]  ;;  %v519_v18 = vld [vmem:[%s294_s18 + $0x28] sm:$0xff]  ;;  %s277_s20 = scalar_lea.vmem [#allocation2], %s855_s19  ;;  %s916_s14 = scalar_lea.vmem %s915_s13, 1536 }
  0x1c   : > { %s665_s28 = sshll.u32 %s277_s20, 4  ;;  %s1108_s28 = int_to_ptr.vmem [resolvable:$true] %s665_s28 }
  0x1d   : > { %s910_s11 = scalar_lea.vmem %s1108_s28, 768  ;;  %p917_p0 = scmp.lt.s32.totalorder %s1108_s28, %s915_s13 }
  0x1e   : > { %813 = vmatmul.mubr.msk.bf16.vlgmr.msra.gmra.mrb[0].mxu0 %vm359_vm3, %v905_v8  ;;  %p911_p11 = scmp.ne.s32.totalorder %s1108_s28, %s910_s11  ;;  %p918_p1 = scmp.lt.s32.totalorder %s916_s14, %s910_s11 }
  0x1f   : > { %816 = vmatprep.mubr.msk.bf16.mxu0 %vm975_vm0, %v974_v1 }
  0x20   : > { %p912_p12 = pnand %p911_p11, %p1052_p5  ;;  %p919_p2 = por %p918_p1, %p917_p0 }
  0x21   : > { %831 = vmatmul.mubr.msk.bf16.gmra.mrb[4].mxu1 %vm447_vm2, %v906_v9 }
  0x22   : > { %834 = vmatprep.mubr.msk.bf16.mxu1 %vm975_vm0, %v974_v1  ;;  %p913_p13 = pneg %p912_p12 }
  0x24   : > { %p920_p3 = pnand %p919_p2, %p913_p13 }
  0x26   : > { %817 = vmatmul.mubr.msk.bf16.gmra.mrb[4].mxu0 %vm359_vm3, %v907_v10 }
  0x27   : > { %820 = vmatprep.mubr.msk.bf16.mxu0 %vm975_vm0, %v974_v1 }
  0x29   : > { %835 = vmatmul.mubr.msk.bf16.gmra.mrb[8].mxu1 %vm447_vm2, %v908_v11 }
  0x2a   : > { %840 = vmatprep.mubr.msk.f32.mxu1 %vm521_vm4, %v514_v12 }
  0x2e   : > { %821 = vmatmul.mubr.msk.bf16.gmra.mrb[8].mxu0 %vm359_vm3, %v909_v13 }
  0x31   : > { %841 = vmatmul.mubr.msk.f32.vlgmr.msra.gmra.mrb[12].mxu1 %vm521_vm4, %v515_v14 }
  0x32   : > { %843 = vmatprep.mubr.msk.f32.mxu1 %vm521_vm4, %v516_v15 }
  0x35   : > { %844 = vmatmul.mubr.msk.f32.gmra.mrb[14].mxu1 %vm521_vm4, %v517_v16 }
  0x36   : > { %846 = vmatprep.mubr.msk.f32.mxu1 %vm521_vm4, %v518_v17 }
  0x39   : > { %847 = vmatmul.mubr.msk.f32.gmra.mrb[16].mxu1 %vm521_vm4, %v519_v18 }
  0xec   : > { %v491_v19 = vpop.f32.mrb[0].mxu1 }
  0xed   : > { %v828_v20 = vpop.f32.mrb[1].mxu1 }
  0xee   : > { %v494_v21 = vpop.f32.mrb[2].mxu1 }
  0xef   : > { %v829_v22 = vpop.f32.mrb[3].mxu1 }
  0xf1   : > { %v403_v23 = vpop.f32.mrb[0].mxu0 }
  0xf2   : > { %v492_v24 = vadd.f32 %v491_v19, %v403_v23  ;;  %v814_v25 = vpop.f32.mrb[1].mxu0 }
  0xf3   : > { %v406_v26 = vpop.f32.mrb[2].mxu0 }
  0xf4   : > { %v495_v27 = vadd.f32 %v494_v21, %v406_v26  ;;  %v815_v28 = vpop.f32.mrb[3].mxu0  ;;  %v499_v29 = vpop.f32.mrb[4].mxu1 }
  0xf5   : > { %v832_v30 = vpop.f32.mrb[5].mxu1 }
  0xf6   : > { %v502_v31 = vpop.f32.mrb[6].mxu1 }
  0xf7   : > { %v833_v32 = vpop.f32.mrb[7].mxu1 }
  0xf9   : > { %v411_v33 = vpop.f32.mrb[4].mxu0 }
  0xfa   : > { %v500_v34 = vadd.f32 %v499_v29, %v411_v33  ;;  %v818_v35 = vpop.f32.mrb[5].mxu0 }
  0xfb   : > { %v414_v36 = vpop.f32.mrb[6].mxu0 }
  0xfc   : > { %v503_v37 = vadd.f32 %v502_v31, %v414_v36  ;;  %v819_v38 = vpop.f32.mrb[7].mxu0  ;;  %v507_v39 = vpop.f32.mrb[8].mxu1 }
  0xfd   : > { %v836_v40 = vpop.f32.mrb[9].mxu1 }
  0xfe   : > { %v510_v41 = vpop.f32.mrb[10].mxu1 }
  0xff   : > { %v837_v42 = vpop.f32.mrb[11].mxu1 }
 0x101   : > { %v419_v43 = vpop.f32.mrb[8].mxu0 }
 0x102   : > { %v508_v44 = vadd.f32 %v507_v39, %v419_v43  ;;  %v822_v45 = vpop.f32.mrb[9].mxu0 }
 0x103   : > { %v422_v46 = vpop.f32.mrb[10].mxu0 }
 0x104   : > { %v511_v47 = vadd.f32 %v510_v41, %v422_v46  ;;  %v823_v48 = vpop.f32.mrb[11].mxu0  ;;  %v842_v49 = vpop.f32.mrb[12].mxu1 }
 0x105   : > { %v640_v50 = vadd.f32 %v842_v49, %v495_v27  ;;  %v610_v51 = vpop.f32.mrb[13].mxu1 }
 0x106   : > { %v639_v52 = vadd.f32 %v610_v51, %v492_v24 }
 0x107   : > { %646 = vst [vmem:[%s277_s20 + $0x8] sm:$0xff] %v640_v50 }
 0x108   : > { %645 = vst [vmem:[%s277_s20] sm:$0xff] %v639_v52  ;;  %v845_v53 = vpop.f32.mrb[14].mxu1 }
 0x109   : > { %v642_v54 = vadd.f32 %v845_v53, %v503_v37  ;;  %v620_v55 = vpop.f32.mrb[15].mxu1 }
 0x10a   : > { %v641_v56 = vadd.f32 %v620_v55, %v500_v34 }
 0x10b   : > { %648 = vst [vmem:[%s277_s20 + $0x18] sm:$0xff] %v642_v54 }
 0x10c   : > { %647 = vst [vmem:[%s277_s20 + $0x10] sm:$0xff] %v641_v56  ;;  %v848_v57 = vpop.f32.mrb[16].mxu1 }
 0x10d   : > { %v644_v58 = vadd.f32 %v848_v57, %v511_v47  ;;  %v630_v59 = vpop.f32.mrb[17].mxu1 }
 0x10e   : > { %v643_v60 = vadd.f32 %v630_v59, %v508_v44 }
 0x10f   : > { %650 = vst [vmem:[%s277_s20 + $0x28] sm:$0xff] %v644_v58 }
 0x110   : > { %649 = vst [vmem:[%s277_s20 + $0x20] sm:$0xff] %v643_v60 }
 0x111   : > { %923 = shalt.err (!%p920_p3)
}
 0x112   : > { %s924_s15 = scalar_lea.hbm %s1113_s10, 768  ;;  %s928_s17 = scalar_lea.hbm %s1164_s6, 1536 }
 0x113   : > { %p925_p4 = scmp.ne.s32.totalorder %s1113_s10, %s924_s15  ;;  %p929_p9 = scmp.lt.u32.totalorder %s1113_s10, %s1164_s6 }
 0x114   : > { %p930_p10 = scmp.lt.u32.totalorder %s928_s17, %s924_s15  ;;  %p932_p12 = scmp.lt.u32.totalorder %s924_s15, %s1113_s10 }
 0x115   : > { %p926_p7 = pnand %p925_p4, %p1052_p5 }
 0x116   : > { %p931_p11 = por %p930_p10, %p929_p9 }
 0x117   : > { %p927_p8 = pneg %p926_p7 }
 0x118   : > { %p933_p13 = por %p932_p12, %p931_p11 }
 0x11a   : > { %p934_p0 = pnand %p933_p13, %p927_p8 }
 0x11c   : > { %937 = shalt.err (!%p934_p0)
}
 0x11d   : > { %s977_s26 = smov 128   ;;  %s978_s29 = smov 8  }
 0x11e   : > { %856 = dma.vmem_to_hbm [thread:$0]  (%p1052_p5), %s1108_s28, 768, %s1113_s10, %s1117_s25, %s977_s26, %s977_s26, %s978_s29  }
 0x11f PF: > { %p862_p1 = scmp.ge.s32.totalorder %s972_s24, 2  ;;  %s680_s9 = sand.u32 1, %s960_s21  }
 0x120   : > { %s681_s11 = scalar_lea.sflag [#allocation3], %s680_s9 }
 0x121   : > { %p859_p2 = pnand %p862_p1, %p1056_p6 }
 0x123   : > { %955 = dma.done.wait (!%p859_p2), %s681_s11, 768  }
 0x124   : > { %957 = vsyncadd (!%p859_p2), %s681_s11, 4294966528  ;;  %p16_p3 = scmp.ge.s32.totalorder %s1039_s27, 4   ;;  %s1167_s21 = smov %s964_s22 }
 0x125   : > { %s1168_s22 = smov %s968_s23  ;;  %s1169_s23 = smov %s1050_s30 }
 0x126   : > { %s1170_s24 = smov %s1039_s27  ;;  %18 = sbr.rel (!%p16_p3) target bundleno = 3 (0x3), region = 85 }
 0x12d   :  { %686 = vsyncpa [#allocation3], 1 }
 0x12e   :  { %688 = vsyncpa [#allocation3 + $0x1], 1 }

</bundles_post_ra>
